<compile_context>
chip_gen: v5e
topology: v5e:2x2
jax: 0.10.0
libtpu: 0.0.40
codegen_flags: <defaults>
</compile_context>

<pallas_src>
import jax
import jax.numpy as jnp
from jax import lax
from jax.experimental import pallas as pl
from jax.experimental.pallas import tpu as pltpu


_SUBLANE = 8   # f32 sublane multiple
_LANE = 128    # lane width


def _char_lstm_kernel(xg_ref, h0_ref, c0_ref, whh_ref, wfc_ref, bfc_ref,
                      logits_ref, hn_ref, cn_ref):
    """Single invocation: pre-projected per-token gate rows + all weights live in VMEM.

    xg_ref:   (T, Bp, 4H) pre-computed  emb[token] @ W_ih + b  rows (gate order i,f,o,g)
    h0/c0:    (Bp, H)
    whh_ref:  (H, 4H)   gate order i,f,o,g
    wfc_ref:  (H, Vp)   lane-padded fc weight
    bfc_ref:  (1, Vp)
    """
    T = xg_ref.shape[0]
    H = hn_ref.shape[-1]

    # Recurrent weight loaded once; stays live across the (bounded-unroll) time loop.
    w_h = whh_ref[...]                                    # (H, 4H)

    def step(t, carry):
        h, c = carry
        # Only the h-projection sits on the serial critical path; the input projection was
        # folded into the gate table outside the kernel.
        gates = xg_ref[t] + jnp.dot(h, w_h, preferred_element_type=jnp.float32)   # (Bp, 4H)
        ifo = jax.nn.sigmoid(gates[:, :3 * H])            # i, f, o  -- one EUP pass
        g = jnp.tanh(gates[:, 3 * H:])                    # cell candidate -- one EUP pass
        i = ifo[:, 0 * H:1 * H]
        f = ifo[:, 1 * H:2 * H]
        o = ifo[:, 2 * H:3 * H]
        c_new = f * c + i * g
        h_new = o * jnp.tanh(c_new)
        return h_new, c_new

    h, c = lax.fori_loop(0, T, step, (h0_ref[...], c0_ref[...]), unroll=min(T, 8))

    hn_ref[...] = h
    cn_ref[...] = c
    # Dropout is identity in eval mode.
    logits_ref[...] = (jnp.dot(h, wfc_ref[...], preferred_element_type=jnp.float32)
                       + bfc_ref[...])


def prepare_params(params):
    """One-time parameter preprocessing (run once, outside the per-call forward path).

    - permutes gate columns from PyTorch order (i,f,g,o) to (i,f,o,g)
    - folds embedding @ W_ih + (b_ih + b_hh) into a (V, 4H) per-token gate table
    - lane-pads the fc projection to a 128 multiple
    """
    H = params["w_hh"].shape[0]
    V = params["embedding"].shape[0]
    VP = pl.cdiv(V, _LANE) * _LANE

    perm = jnp.concatenate([
        jnp.arange(0 * H, 1 * H),   # i
        jnp.arange(1 * H, 2 * H),   # f
        jnp.arange(3 * H, 4 * H),   # o
        jnp.arange(2 * H, 3 * H),   # g
    ])
    w_ih_p = params["w_ih"].astype(jnp.float32)[:, perm]          # (E, 4H)
    w_hh_p = params["w_hh"].astype(jnp.float32)[:, perm]          # (H, 4H)
    b_p = params["b"].astype(jnp.float32)[:, perm]                # (1, 4H)

    gate_table = params["embedding"].astype(jnp.float32) @ w_ih_p + b_p   # (V, 4H)

    w_fc_pad = jnp.pad(params["w_fc"].astype(jnp.float32), ((0, 0), (0, VP - V)))
    b_fc_pad = jnp.pad(params["b_fc"].astype(jnp.float32), ((0, 0), (0, VP - V)))

    return {
        "gate_table": gate_table,
        "w_hh": w_hh_p,
        "w_fc": w_fc_pad,
        "b_fc": b_fc_pad,
        "hidden_dim": H,
        "vocab_size": V,
        "vocab_padded": VP,
    }


def char_lstm_forward(token_ids, prep, hidden=None):
    """token_ids: (B, T) int32.  Returns (logits (B, V), (h_n, c_n) each (1, B, H))."""
    B, T = token_ids.shape
    H = prep["hidden_dim"]
    V = prep["vocab_size"]
    VP = prep["vocab_padded"]
    BP = pl.cdiv(B, _SUBLANE) * _SUBLANE

    # Gather pre-projected gate rows (time-major) and pad batch to the sublane multiple.
    ids_tm = jnp.transpose(token_ids, (1, 0))                      # (T, B) tiny int transpose
    x_gates = jnp.take(prep["gate_table"], ids_tm, axis=0)         # (T, B, 4H)
    x_gates = jnp.pad(x_gates, ((0, 0), (0, BP - B), (0, 0)))      # (T, BP, 4H)

    if hidden is None:
        h0 = jnp.zeros((BP, H), jnp.float32)
        c0 = jnp.zeros((BP, H), jnp.float32)
    else:
        h0 = jnp.pad(jnp.asarray(hidden[0], jnp.float32).reshape(B, H), ((0, BP - B), (0, 0)))
        c0 = jnp.pad(jnp.asarray(hidden[1], jnp.float32).reshape(B, H), ((0, BP - B), (0, 0)))

    vmem = pltpu.MemorySpace.VMEM
    logits_p, h_n, c_n = pl.pallas_call(
        _char_lstm_kernel,
        out_shape=(
            jax.ShapeDtypeStruct((BP, VP), jnp.float32),   # lane-dense padded logits
            jax.ShapeDtypeStruct((BP, H), jnp.float32),    # h_n
            jax.ShapeDtypeStruct((BP, H), jnp.float32),    # c_n
        ),
        in_specs=[pl.BlockSpec(memory_space=vmem)] * 6,
        out_specs=(pl.BlockSpec(memory_space=vmem),) * 3,
    )(x_gates, h0, c0, prep["w_hh"], prep["w_fc"], prep["b_fc"])

    logits = logits_p[:B, :V]
    # Match PyTorch nn.LSTM hidden format: (num_layers=1, B, H)
    hidden_out = (h_n[None, :B, :], c_n[None, :B, :])
    return logits, hidden_out


def _reference_forward(token_ids, params):
    """Pure-JAX reference of the same math (original gate order i,f,g,o) for correctness."""
    x = jnp.take(params["embedding"], token_ids, axis=0)   # (B, T, E)
    w_ih, w_hh, b = params["w_ih"], params["w_hh"], params["b"]
    H = w_hh.shape[0]
    B, T = x.shape[0], x.shape[1]
    h = jnp.zeros((B, H), jnp.float32)
    c = jnp.zeros((B, H), jnp.float32)
    for t in range(T):
        gates = x[:, t, :] @ w_ih + h @ w_hh + b
        i = jax.nn.sigmoid(gates[:, 0 * H:1 * H])
        f = jax.nn.sigmoid(gates[:, 1 * H:2 * H])
        g = jnp.tanh(gates[:, 2 * H:3 * H])
        o = jax.nn.sigmoid(gates[:, 3 * H:4 * H])
        c = f * c + i * g
        h = o * jnp.tanh(c)
    logits = h @ params["w_fc"] + params["b_fc"]
    return logits, h, c


def init_params(key, vocab_size, embedding_dim, hidden_dim):
    ks = jax.random.split(key, 6)
    u = lambda k, shape: jax.random.uniform(k, shape, jnp.float32, -0.1, 0.1)
    return {
        "embedding": u(ks[0], (vocab_size, embedding_dim)),
        "w_ih": u(ks[1], (embedding_dim, 4 * hidden_dim)),   # gate order i, f, g, o (PyTorch)
        "w_hh": u(ks[2], (hidden_dim, 4 * hidden_dim)),
        "b": u(ks[3], (1, 4 * hidden_dim)),                   # combined b_ih + b_hh
        "w_fc": u(ks[4], (hidden_dim, vocab_size)),
        "b_fc": u(ks[5], (1, vocab_size)),
    }


if __name__ == "__main__":
    B, T = 2, 8
    VOCAB, EMB, HID = 64, 16, 32

    key = jax.random.PRNGKey(0)
    k_par, k_tok = jax.random.split(key)
    params = init_params(k_par, VOCAB, EMB, HID)
    token_ids = jax.random.randint(k_tok, (B, T), 0, VOCAB, dtype=jnp.int32)

    prep = prepare_params(params)   # one-time: fold input projection, permute gates, pad fc

    logits, (h_n, c_n) = char_lstm_forward(token_ids, prep)
    jax.block_until_ready((logits, h_n, c_n))

    # sanity check vs pure-JAX reference (original, un-permuted params)
    ref_logits, ref_h, ref_c = _reference_forward(token_ids, params)
    assert logits.shape == (B, VOCAB)
    assert h_n.shape == (1, B, HID) and c_n.shape == (1, B, HID)
    assert jnp.allclose(logits, ref_logits, atol=1e-4, rtol=1e-4)
    assert jnp.allclose(h_n[0], ref_h, atol=1e-4, rtol=1e-4)
    assert jnp.allclose(c_n[0], ref_c, atol=1e-4, rtol=1e-4)

    print("KERNEL_OK")
</pallas_src>

<mosaic_0001>
module attributes {stable_mosaic.version = 11 : i64} {
  func.func @_char_lstm_kernel(%arg0: memref<8x8x128xf32, #tpu.memory_space<vmem>>, %arg1: memref<8x32xf32, #tpu.memory_space<vmem>>, %arg2: memref<8x32xf32, #tpu.memory_space<vmem>>, %arg3: memref<32x128xf32, #tpu.memory_space<vmem>>, %arg4: memref<32x128xf32, #tpu.memory_space<vmem>>, %arg5: memref<1x128xf32, #tpu.memory_space<vmem>>, %arg6: memref<8x128xf32, #tpu.memory_space<vmem>>, %arg7: memref<8x32xf32, #tpu.memory_space<vmem>>, %arg8: memref<8x32xf32, #tpu.memory_space<vmem>>) attributes {dimension_semantics = [], scalar_prefetch = 0 : i64, scratch_operands = 0 : i64, tpu.core_type = #tpu.core_type<tc>} {
    %c0 = arith.constant 0 : index
    %c0_0 = arith.constant 0 : index
    %0 = vector.load %arg3[%c0, %c0_0] : memref<32x128xf32, #tpu.memory_space<vmem>>, vector<32x128xf32>
    %c0_1 = arith.constant 0 : index
    %c0_2 = arith.constant 0 : index
    %1 = vector.load %arg1[%c0_1, %c0_2] : memref<8x32xf32, #tpu.memory_space<vmem>>, vector<8x32xf32>
    %c0_3 = arith.constant 0 : index
    %c0_4 = arith.constant 0 : index
    %2 = vector.load %arg2[%c0_3, %c0_4] : memref<8x32xf32, #tpu.memory_space<vmem>>, vector<8x32xf32>
    %c0_i32 = arith.constant 0 : i32
    %3 = arith.index_cast %c0_i32 : i32 to index
    %c0_5 = arith.constant 0 : index
    %c0_6 = arith.constant 0 : index
    %4 = vector.load %arg0[%3, %c0_5, %c0_6] : memref<8x8x128xf32, #tpu.memory_space<vmem>>, vector<1x8x128xf32>
    %5 = vector.shape_cast %4 : vector<1x8x128xf32> to vector<8x128xf32>
    %cst = arith.constant dense<0.000000e+00> : vector<8x128xf32>
    %6 = tpu.matmul %1, %0, %cst {dimension_numbers = #tpu.dot_dimension_numbers<[1], [0], [0], [1], [0, 0, 1, 1], [], []>} : vector<8x32xf32>, vector<32x128xf32>, vector<8x128xf32> -> vector<8x128xf32>
    %7 = arith.addf %5, %6 : vector<8x128xf32>
    %8 = vector.extract_strided_slice %7 {offsets = [0, 0], sizes = [8, 96], strides = [1, 1]} : vector<8x128xf32> to vector<8x96xf32>
    %9 = arith.negf %8 : vector<8x96xf32>
    %10 = math.exp %9 : vector<8x96xf32>
    %cst_7 = arith.constant 1.000000e+00 : f32
    %11 = vector.broadcast %cst_7 : f32 to vector<8x96xf32>
    %12 = arith.addf %11, %10 : vector<8x96xf32>
    %13 = arith.divf %11, %12 : vector<8x96xf32>
    %14 = vector.extract_strided_slice %7 {offsets = [0, 96], sizes = [8, 32], strides = [1, 1]} : vector<8x128xf32> to vector<8x32xf32>
    %15 = math.tanh %14 : vector<8x32xf32>
    %16 = vector.extract_strided_slice %13 {offsets = [0, 0], sizes = [8, 32], strides = [1, 1]} : vector<8x96xf32> to vector<8x32xf32>
    %17 = vector.extract_strided_slice %13 {offsets = [0, 32], sizes = [8, 32], strides = [1, 1]} : vector<8x96xf32> to vector<8x32xf32>
    %18 = vector.extract_strided_slice %13 {offsets = [0, 64], sizes = [8, 32], strides = [1, 1]} : vector<8x96xf32> to vector<8x32xf32>
    %19 = arith.mulf %17, %2 : vector<8x32xf32>
    %20 = arith.mulf %16, %15 : vector<8x32xf32>
    %21 = arith.addf %19, %20 : vector<8x32xf32>
    %22 = math.tanh %21 : vector<8x32xf32>
    %23 = arith.mulf %18, %22 : vector<8x32xf32>
    %c1_i32 = arith.constant 1 : i32
    %24 = arith.index_cast %c1_i32 : i32 to index
    %c0_8 = arith.constant 0 : index
    %c0_9 = arith.constant 0 : index
    %25 = vector.load %arg0[%24, %c0_8, %c0_9] : memref<8x8x128xf32, #tpu.memory_space<vmem>>, vector<1x8x128xf32>
    %26 = vector.shape_cast %25 : vector<1x8x128xf32> to vector<8x128xf32>
    %cst_10 = arith.constant dense<0.000000e+00> : vector<8x128xf32>
    %27 = tpu.matmul %23, %0, %cst_10 {dimension_numbers = #tpu.dot_dimension_numbers<[1], [0], [0], [1], [0, 0, 1, 1], [], []>} : vector<8x32xf32>, vector<32x128xf32>, vector<8x128xf32> -> vector<8x128xf32>
    %28 = arith.addf %26, %27 : vector<8x128xf32>
    %29 = vector.extract_strided_slice %28 {offsets = [0, 0], sizes = [8, 96], strides = [1, 1]} : vector<8x128xf32> to vector<8x96xf32>
    %30 = arith.negf %29 : vector<8x96xf32>
    %31 = math.exp %30 : vector<8x96xf32>
    %cst_11 = arith.constant 1.000000e+00 : f32
    %32 = vector.broadcast %cst_11 : f32 to vector<8x96xf32>
    %33 = arith.addf %32, %31 : vector<8x96xf32>
    %34 = arith.divf %32, %33 : vector<8x96xf32>
    %35 = vector.extract_strided_slice %28 {offsets = [0, 96], sizes = [8, 32], strides = [1, 1]} : vector<8x128xf32> to vector<8x32xf32>
    %36 = math.tanh %35 : vector<8x32xf32>
    %37 = vector.extract_strided_slice %34 {offsets = [0, 0], sizes = [8, 32], strides = [1, 1]} : vector<8x96xf32> to vector<8x32xf32>
    %38 = vector.extract_strided_slice %34 {offsets = [0, 32], sizes = [8, 32], strides = [1, 1]} : vector<8x96xf32> to vector<8x32xf32>
    %39 = vector.extract_strided_slice %34 {offsets = [0, 64], sizes = [8, 32], strides = [1, 1]} : vector<8x96xf32> to vector<8x32xf32>
    %40 = arith.mulf %38, %21 : vector<8x32xf32>
    %41 = arith.mulf %37, %36 : vector<8x32xf32>
    %42 = arith.addf %40, %41 : vector<8x32xf32>
    %43 = math.tanh %42 : vector<8x32xf32>
    %44 = arith.mulf %39, %43 : vector<8x32xf32>
    %c2_i32 = arith.constant 2 : i32
    %45 = arith.index_cast %c2_i32 : i32 to index
    %c0_12 = arith.constant 0 : index
    %c0_13 = arith.constant 0 : index
    %46 = vector.load %arg0[%45, %c0_12, %c0_13] : memref<8x8x128xf32, #tpu.memory_space<vmem>>, vector<1x8x128xf32>
    %47 = vector.shape_cast %46 : vector<1x8x128xf32> to vector<8x128xf32>
    %cst_14 = arith.constant dense<0.000000e+00> : vector<8x128xf32>
    %48 = tpu.matmul %44, %0, %cst_14 {dimension_numbers = #tpu.dot_dimension_numbers<[1], [0], [0], [1], [0, 0, 1, 1], [], []>} : vector<8x32xf32>, vector<32x128xf32>, vector<8x128xf32> -> vector<8x128xf32>
    %49 = arith.addf %47, %48 : vector<8x128xf32>
    %50 = vector.extract_strided_slice %49 {offsets = [0, 0], sizes = [8, 96], strides = [1, 1]} : vector<8x128xf32> to vector<8x96xf32>
    %51 = arith.negf %50 : vector<8x96xf32>
    %52 = math.exp %51 : vector<8x96xf32>
    %cst_15 = arith.constant 1.000000e+00 : f32
    %53 = vector.broadcast %cst_15 : f32 to vector<8x96xf32>
    %54 = arith.addf %53, %52 : vector<8x96xf32>
    %55 = arith.divf %53, %54 : vector<8x96xf32>
    %56 = vector.extract_strided_slice %49 {offsets = [0, 96], sizes = [8, 32], strides = [1, 1]} : vector<8x128xf32> to vector<8x32xf32>
    %57 = math.tanh %56 : vector<8x32xf32>
    %58 = vector.extract_strided_slice %55 {offsets = [0, 0], sizes = [8, 32], strides = [1, 1]} : vector<8x96xf32> to vector<8x32xf32>
    %59 = vector.extract_strided_slice %55 {offsets = [0, 32], sizes = [8, 32], strides = [1, 1]} : vector<8x96xf32> to vector<8x32xf32>
    %60 = vector.extract_strided_slice %55 {offsets = [0, 64], sizes = [8, 32], strides = [1, 1]} : vector<8x96xf32> to vector<8x32xf32>
    %61 = arith.mulf %59, %42 : vector<8x32xf32>
    %62 = arith.mulf %58, %57 : vector<8x32xf32>
    %63 = arith.addf %61, %62 : vector<8x32xf32>
    %64 = math.tanh %63 : vector<8x32xf32>
    %65 = arith.mulf %60, %64 : vector<8x32xf32>
    %c3_i32 = arith.constant 3 : i32
    %66 = arith.index_cast %c3_i32 : i32 to index
    %c0_16 = arith.constant 0 : index
    %c0_17 = arith.constant 0 : index
    %67 = vector.load %arg0[%66, %c0_16, %c0_17] : memref<8x8x128xf32, #tpu.memory_space<vmem>>, vector<1x8x128xf32>
    %68 = vector.shape_cast %67 : vector<1x8x128xf32> to vector<8x128xf32>
    %cst_18 = arith.constant dense<0.000000e+00> : vector<8x128xf32>
    %69 = tpu.matmul %65, %0, %cst_18 {dimension_numbers = #tpu.dot_dimension_numbers<[1], [0], [0], [1], [0, 0, 1, 1], [], []>} : vector<8x32xf32>, vector<32x128xf32>, vector<8x128xf32> -> vector<8x128xf32>
    %70 = arith.addf %68, %69 : vector<8x128xf32>
    %71 = vector.extract_strided_slice %70 {offsets = [0, 0], sizes = [8, 96], strides = [1, 1]} : vector<8x128xf32> to vector<8x96xf32>
    %72 = arith.negf %71 : vector<8x96xf32>
    %73 = math.exp %72 : vector<8x96xf32>
    %cst_19 = arith.constant 1.000000e+00 : f32
    %74 = vector.broadcast %cst_19 : f32 to vector<8x96xf32>
    %75 = arith.addf %74, %73 : vector<8x96xf32>
    %76 = arith.divf %74, %75 : vector<8x96xf32>
    %77 = vector.extract_strided_slice %70 {offsets = [0, 96], sizes = [8, 32], strides = [1, 1]} : vector<8x128xf32> to vector<8x32xf32>
    %78 = math.tanh %77 : vector<8x32xf32>
    %79 = vector.extract_strided_slice %76 {offsets = [0, 0], sizes = [8, 32], strides = [1, 1]} : vector<8x96xf32> to vector<8x32xf32>
    %80 = vector.extract_strided_slice %76 {offsets = [0, 32], sizes = [8, 32], strides = [1, 1]} : vector<8x96xf32> to vector<8x32xf32>
    %81 = vector.extract_strided_slice %76 {offsets = [0, 64], sizes = [8, 32], strides = [1, 1]} : vector<8x96xf32> to vector<8x32xf32>
    %82 = arith.mulf %80, %63 : vector<8x32xf32>
    %83 = arith.mulf %79, %78 : vector<8x32xf32>
    %84 = arith.addf %82, %83 : vector<8x32xf32>
    %85 = math.tanh %84 : vector<8x32xf32>
    %86 = arith.mulf %81, %85 : vector<8x32xf32>
    %c4_i32 = arith.constant 4 : i32
    %87 = arith.index_cast %c4_i32 : i32 to index
    %c0_20 = arith.constant 0 : index
    %c0_21 = arith.constant 0 : index
    %88 = vector.load %arg0[%87, %c0_20, %c0_21] : memref<8x8x128xf32, #tpu.memory_space<vmem>>, vector<1x8x128xf32>
    %89 = vector.shape_cast %88 : vector<1x8x128xf32> to vector<8x128xf32>
    %cst_22 = arith.constant dense<0.000000e+00> : vector<8x128xf32>
    %90 = tpu.matmul %86, %0, %cst_22 {dimension_numbers = #tpu.dot_dimension_numbers<[1], [0], [0], [1], [0, 0, 1, 1], [], []>} : vector<8x32xf32>, vector<32x128xf32>, vector<8x128xf32> -> vector<8x128xf32>
    %91 = arith.addf %89, %90 : vector<8x128xf32>
    %92 = vector.extract_strided_slice %91 {offsets = [0, 0], sizes = [8, 96], strides = [1, 1]} : vector<8x128xf32> to vector<8x96xf32>
    %93 = arith.negf %92 : vector<8x96xf32>
    %94 = math.exp %93 : vector<8x96xf32>
    %cst_23 = arith.constant 1.000000e+00 : f32
    %95 = vector.broadcast %cst_23 : f32 to vector<8x96xf32>
    %96 = arith.addf %95, %94 : vector<8x96xf32>
    %97 = arith.divf %95, %96 : vector<8x96xf32>
    %98 = vector.extract_strided_slice %91 {offsets = [0, 96], sizes = [8, 32], strides = [1, 1]} : vector<8x128xf32> to vector<8x32xf32>
    %99 = math.tanh %98 : vector<8x32xf32>
    %100 = vector.extract_strided_slice %97 {offsets = [0, 0], sizes = [8, 32], strides = [1, 1]} : vector<8x96xf32> to vector<8x32xf32>
    %101 = vector.extract_strided_slice %97 {offsets = [0, 32], sizes = [8, 32], strides = [1, 1]} : vector<8x96xf32> to vector<8x32xf32>
    %102 = vector.extract_strided_slice %97 {offsets = [0, 64], sizes = [8, 32], strides = [1, 1]} : vector<8x96xf32> to vector<8x32xf32>
    %103 = arith.mulf %101, %84 : vector<8x32xf32>
    %104 = arith.mulf %100, %99 : vector<8x32xf32>
    %105 = arith.addf %103, %104 : vector<8x32xf32>
    %106 = math.tanh %105 : vector<8x32xf32>
    %107 = arith.mulf %102, %106 : vector<8x32xf32>
    %c5_i32 = arith.constant 5 : i32
    %108 = arith.index_cast %c5_i32 : i32 to index
    %c0_24 = arith.constant 0 : index
    %c0_25 = arith.constant 0 : index
    %109 = vector.load %arg0[%108, %c0_24, %c0_25] : memref<8x8x128xf32, #tpu.memory_space<vmem>>, vector<1x8x128xf32>
    %110 = vector.shape_cast %109 : vector<1x8x128xf32> to vector<8x128xf32>
    %cst_26 = arith.constant dense<0.000000e+00> : vector<8x128xf32>
    %111 = tpu.matmul %107, %0, %cst_26 {dimension_numbers = #tpu.dot_dimension_numbers<[1], [0], [0], [1], [0, 0, 1, 1], [], []>} : vector<8x32xf32>, vector<32x128xf32>, vector<8x128xf32> -> vector<8x128xf32>
    %112 = arith.addf %110, %111 : vector<8x128xf32>
    %113 = vector.extract_strided_slice %112 {offsets = [0, 0], sizes = [8, 96], strides = [1, 1]} : vector<8x128xf32> to vector<8x96xf32>
    %114 = arith.negf %113 : vector<8x96xf32>
    %115 = math.exp %114 : vector<8x96xf32>
    %cst_27 = arith.constant 1.000000e+00 : f32
    %116 = vector.broadcast %cst_27 : f32 to vector<8x96xf32>
    %117 = arith.addf %116, %115 : vector<8x96xf32>
    %118 = arith.divf %116, %117 : vector<8x96xf32>
    %119 = vector.extract_strided_slice %112 {offsets = [0, 96], sizes = [8, 32], strides = [1, 1]} : vector<8x128xf32> to vector<8x32xf32>
    %120 = math.tanh %119 : vector<8x32xf32>
    %121 = vector.extract_strided_slice %118 {offsets = [0, 0], sizes = [8, 32], strides = [1, 1]} : vector<8x96xf32> to vector<8x32xf32>
    %122 = vector.extract_strided_slice %118 {offsets = [0, 32], sizes = [8, 32], strides = [1, 1]} : vector<8x96xf32> to vector<8x32xf32>
    %123 = vector.extract_strided_slice %118 {offsets = [0, 64], sizes = [8, 32], strides = [1, 1]} : vector<8x96xf32> to vector<8x32xf32>
    %124 = arith.mulf %122, %105 : vector<8x32xf32>
    %125 = arith.mulf %121, %120 : vector<8x32xf32>
    %126 = arith.addf %124, %125 : vector<8x32xf32>
    %127 = math.tanh %126 : vector<8x32xf32>
    %128 = arith.mulf %123, %127 : vector<8x32xf32>
    %c6_i32 = arith.constant 6 : i32
    %129 = arith.index_cast %c6_i32 : i32 to index
    %c0_28 = arith.constant 0 : index
    %c0_29 = arith.constant 0 : index
    %130 = vector.load %arg0[%129, %c0_28, %c0_29] : memref<8x8x128xf32, #tpu.memory_space<vmem>>, vector<1x8x128xf32>
    %131 = vector.shape_cast %130 : vector<1x8x128xf32> to vector<8x128xf32>
    %cst_30 = arith.constant dense<0.000000e+00> : vector<8x128xf32>
    %132 = tpu.matmul %128, %0, %cst_30 {dimension_numbers = #tpu.dot_dimension_numbers<[1], [0], [0], [1], [0, 0, 1, 1], [], []>} : vector<8x32xf32>, vector<32x128xf32>, vector<8x128xf32> -> vector<8x128xf32>
    %133 = arith.addf %131, %132 : vector<8x128xf32>
    %134 = vector.extract_strided_slice %133 {offsets = [0, 0], sizes = [8, 96], strides = [1, 1]} : vector<8x128xf32> to vector<8x96xf32>
    %135 = arith.negf %134 : vector<8x96xf32>
    %136 = math.exp %135 : vector<8x96xf32>
    %cst_31 = arith.constant 1.000000e+00 : f32
    %137 = vector.broadcast %cst_31 : f32 to vector<8x96xf32>
    %138 = arith.addf %137, %136 : vector<8x96xf32>
    %139 = arith.divf %137, %138 : vector<8x96xf32>
    %140 = vector.extract_strided_slice %133 {offsets = [0, 96], sizes = [8, 32], strides = [1, 1]} : vector<8x128xf32> to vector<8x32xf32>
    %141 = math.tanh %140 : vector<8x32xf32>
    %142 = vector.extract_strided_slice %139 {offsets = [0, 0], sizes = [8, 32], strides = [1, 1]} : vector<8x96xf32> to vector<8x32xf32>
    %143 = vector.extract_strided_slice %139 {offsets = [0, 32], sizes = [8, 32], strides = [1, 1]} : vector<8x96xf32> to vector<8x32xf32>
    %144 = vector.extract_strided_slice %139 {offsets = [0, 64], sizes = [8, 32], strides = [1, 1]} : vector<8x96xf32> to vector<8x32xf32>
    %145 = arith.mulf %143, %126 : vector<8x32xf32>
    %146 = arith.mulf %142, %141 : vector<8x32xf32>
    %147 = arith.addf %145, %146 : vector<8x32xf32>
    %148 = math.tanh %147 : vector<8x32xf32>
    %149 = arith.mulf %144, %148 : vector<8x32xf32>
    %c7_i32 = arith.constant 7 : i32
    %150 = arith.index_cast %c7_i32 : i32 to index
    %c0_32 = arith.constant 0 : index
    %c0_33 = arith.constant 0 : index
    %151 = vector.load %arg0[%150, %c0_32, %c0_33] : memref<8x8x128xf32, #tpu.memory_space<vmem>>, vector<1x8x128xf32>
    %152 = vector.shape_cast %151 : vector<1x8x128xf32> to vector<8x128xf32>
    %cst_34 = arith.constant dense<0.000000e+00> : vector<8x128xf32>
    %153 = tpu.matmul %149, %0, %cst_34 {dimension_numbers = #tpu.dot_dimension_numbers<[1], [0], [0], [1], [0, 0, 1, 1], [], []>} : vector<8x32xf32>, vector<32x128xf32>, vector<8x128xf32> -> vector<8x128xf32>
    %154 = arith.addf %152, %153 : vector<8x128xf32>
    %155 = vector.extract_strided_slice %154 {offsets = [0, 0], sizes = [8, 96], strides = [1, 1]} : vector<8x128xf32> to vector<8x96xf32>
    %156 = arith.negf %155 : vector<8x96xf32>
    %157 = math.exp %156 : vector<8x96xf32>
    %cst_35 = arith.constant 1.000000e+00 : f32
    %158 = vector.broadcast %cst_35 : f32 to vector<8x96xf32>
    %159 = arith.addf %158, %157 : vector<8x96xf32>
    %160 = arith.divf %158, %159 : vector<8x96xf32>
    %161 = vector.extract_strided_slice %154 {offsets = [0, 96], sizes = [8, 32], strides = [1, 1]} : vector<8x128xf32> to vector<8x32xf32>
    %162 = math.tanh %161 : vector<8x32xf32>
    %163 = vector.extract_strided_slice %160 {offsets = [0, 0], sizes = [8, 32], strides = [1, 1]} : vector<8x96xf32> to vector<8x32xf32>
    %164 = vector.extract_strided_slice %160 {offsets = [0, 32], sizes = [8, 32], strides = [1, 1]} : vector<8x96xf32> to vector<8x32xf32>
    %165 = vector.extract_strided_slice %160 {offsets = [0, 64], sizes = [8, 32], strides = [1, 1]} : vector<8x96xf32> to vector<8x32xf32>
    %166 = arith.mulf %164, %147 : vector<8x32xf32>
    %167 = arith.mulf %163, %162 : vector<8x32xf32>
    %168 = arith.addf %166, %167 : vector<8x32xf32>
    %169 = math.tanh %168 : vector<8x32xf32>
    %170 = arith.mulf %165, %169 : vector<8x32xf32>
    %c8_i32 = arith.constant 8 : i32
    %c0_36 = arith.constant 0 : index
    %c0_37 = arith.constant 0 : index
    %171 = vector.load %arg7[%c0_36, %c0_37] : memref<8x32xf32, #tpu.memory_space<vmem>>, vector<8x32xf32>
    tpu.vector_store %arg7[%c0_36, %c0_37], %170 {strides = array<i32>} : memref<8x32xf32, #tpu.memory_space<vmem>>, vector<8x32xf32>,
    %c0_38 = arith.constant 0 : index
    %c0_39 = arith.constant 0 : index
    %172 = vector.load %arg8[%c0_38, %c0_39] : memref<8x32xf32, #tpu.memory_space<vmem>>, vector<8x32xf32>
    tpu.vector_store %arg8[%c0_38, %c0_39], %168 {strides = array<i32>} : memref<8x32xf32, #tpu.memory_space<vmem>>, vector<8x32xf32>,
    %c0_40 = arith.constant 0 : index
    %c0_41 = arith.constant 0 : index
    %173 = vector.load %arg4[%c0_40, %c0_41] : memref<32x128xf32, #tpu.memory_space<vmem>>, vector<32x128xf32>
    %cst_42 = arith.constant dense<0.000000e+00> : vector<8x128xf32>
    %174 = tpu.matmul %170, %173, %cst_42 {dimension_numbers = #tpu.dot_dimension_numbers<[1], [0], [0], [1], [0, 0, 1, 1], [], []>} : vector<8x32xf32>, vector<32x128xf32>, vector<8x128xf32> -> vector<8x128xf32>
    %c0_43 = arith.constant 0 : index
    %c0_44 = arith.constant 0 : index
    %175 = vector.load %arg5[%c0_43, %c0_44] : memref<1x128xf32, #tpu.memory_space<vmem>>, vector<1x128xf32>
    %176 = vector.broadcast %175 : vector<1x128xf32> to vector<8x128xf32>
    %177 = arith.addf %174, %176 : vector<8x128xf32>
    %c0_45 = arith.constant 0 : index
    %c0_46 = arith.constant 0 : index
    %178 = vector.load %arg6[%c0_45, %c0_46] : memref<8x128xf32, #tpu.memory_space<vmem>>, vector<8x128xf32>
    tpu.vector_store %arg6[%c0_45, %c0_46], %177 {strides = array<i32>} : memref<8x128xf32, #tpu.memory_space<vmem>>, vector<8x128xf32>,
    return
  }
}

</mosaic_0001>

<bundles_post_ra>
// kernel: tpu_custom_call.1
= control target key start
LH: loop header
LB: loop body
LE: loop exit
PB: predicated region body
PF: predicated region fallthrough
CT: control target
= control target key end

     0   :  { %14 = vsyncpa [#allocation3], 0  ;;  %s1147_s0 = inlined_call_operand.hbm [shape: f32[8,8,128], index: 0, kind: input, shape index: {}]   ;;  %s1148_s1 = inlined_call_operand.hbm [shape: f32[8,32], index: 1, kind: input, shape index: {}]   ;;  %s1149_s2 = inlined_call_operand.hbm [shape: f32[8,32], index: 2, kind: input, shape index: {}]   ;;  %s1150_s3 = inlined_call_operand.hbm [shape: f32[32,128], index: 3, kind: input, shape index: {}]   ;;  %s1151_s4 = inlined_call_operand.hbm [shape: f32[32,128], index: 4, kind: input, shape index: {}]   ;;  %s1152_s5 = inlined_call_operand.vmem [shape: f32[1,128], index: 5, kind: input, shape index: {}]   ;;  %s1153_s6 = inlined_call_operand.hbm [shape: f32[8,128], index: 6, kind: output, shape index: {0}]   ;;  %s1154_s7 = inlined_call_operand.hbm [shape: f32[8,32], index: 7, kind: output, shape index: {1}]   ;;  %s1155_s8 = inlined_call_operand.hbm [shape: f32[8,32], index: 8, kind: output, shape index: {2}]  }
   0x1   :  { %15 = vsyncpa [#allocation6], 0 }
   0x2   :  { %16 = vsyncpa [#allocation9], 0 }
   0x3   :  { %17 = vsyncpa [#allocation4], 0  ;;  %s37_s29 = sshll.u32 %s1148_s1, 4  ;;  %s38_s29 = int_to_ptr.hbm [resolvable:$true] %s37_s29 }
   0x4   :  { %18 = vsyncpa [#allocation13], 0  ;;  %s1018_s30 = smov [#allocation5]   ;;  %s58_s12 = sshll.u32 %s1150_s3, 4  ;;  %s59_s12 = int_to_ptr.hbm [resolvable:$true] %s58_s12 }
   0x5   :  { %s39_s9 = sshll.u32 %s1018_s30, 4  ;;  %s1019_s13 = smov [#allocation8]   ;;  %s40_s9 = int_to_ptr.vmem [resolvable:$true] %s39_s9 }
   0x6   :  { %42 = dma.hbm_to_vmem [thread:$0]  %s38_s29, 128, %s40_s9, [#allocation6]  }
   0x7   :  { %s60_s14 = sshll.u32 %s1019_s13, 4  ;;  %s23_s17 = sshll.u32 %s1147_s0, 4  ;;  %s61_s14 = int_to_ptr.vmem [resolvable:$true] %s60_s14  ;;  %s24_s17 = int_to_ptr.hbm [resolvable:$true] %s23_s17 }
   0x8   :  { %s1020_s1 = smov 128   ;;  %s1021_s18 = smov 8  }
   0x9   :  { %66 = dma.hbm_to_vmem [thread:$0]  %s59_s12, 512, %s61_s14, [#allocation9], %s1020_s1, %s1020_s1, %s1021_s18  }
   0xa   :  { %s48_s21 = sshll.u32 %s1149_s2, 4  ;;  %s1022_s22 = smov [#allocation2]   ;;  %s49_s21 = int_to_ptr.hbm [resolvable:$true] %s48_s21 }
   0xb   :  { %s25_s23 = sshll.u32 %s1022_s22, 4  ;;  %s1023_s3 = smov [#allocation7]   ;;  %s26_s23 = int_to_ptr.vmem [resolvable:$true] %s25_s23 }
   0xc   :  { %31 = dma.hbm_to_vmem [thread:$0]  %s24_s17, 1024, %s26_s23, [#allocation3], %s1020_s1, %s1020_s1, %s1021_s18  }
   0xd   :  { %s50_s24 = sshll.u32 %s1023_s3, 4  ;;  %s71_s0 = sshll.u32 %s1151_s4, 4  ;;  %s51_s24 = int_to_ptr.vmem [resolvable:$true] %s50_s24  ;;  %s72_s0 = int_to_ptr.hbm [resolvable:$true] %s71_s0 }
   0xe   :  { %53 = dma.hbm_to_vmem [thread:$0]  %s49_s21, 128, %s51_s24, [#allocation6]  }
   0xf   :  { %s1024_s27 = smov [#allocation10]  }
  0x10   :  { %s73_s28 = sshll.u32 %s1024_s27, 4  ;;  %s74_s28 = int_to_ptr.vmem [resolvable:$true] %s73_s28 }
  0x11   :  { %79 = dma.hbm_to_vmem [thread:$0]  %s72_s0, 512, %s74_s28, [#allocation9], %s1020_s1, %s1020_s1, %s1021_s18  }
  0x12   :  { %1008 = dma.done.wait [#allocation3], 1024  }
  0x13   :  { %1009 = vsyncadd [#allocation3], 4294966272 }
  0x14   :  { %1010 = dma.done.wait [#allocation6], 256  }
  0x15   :  { %1011 = vsyncadd [#allocation6], 4294967040 }
  0x16   :  { %1012 = dma.done.wait [#allocation9], 1024  }
  0x17   :  { %1013 = vsyncadd [#allocation9], 4294966272  ;;  %v105_v0 = vld [vmem:[#allocation8 + $0x18] sm:$0xff]  ;;  %v104_v1 = vld [vmem:[#allocation8 + $0x10] sm:$0xff]  ;;  %vm109_vm0 = vcmask 261120   ;;  %s1025_s2 = smov 32  }
  0x18   :  { %125 = vmatpush.msra.mxu0 %v105_v0  ;;  %194 = vmatpush.msra.mxu1 %v105_v0  ;;  %v103_v2 = vld [vmem:[#allocation8 + $0x8] sm:$0xff]  ;;  %v102_v3 = vld [vmem:[#allocation8] sm:$0xff]  ;;  %v106_v4 = vld [vmem:[#allocation5] sm:$0xff]  ;;  %s1026_s4 = smov 64   ;;  %s1027_s29 = smov 96  }
  0x19   :  { %259 = vmatpush.msra.mxu2 %v105_v0  ;;  %324 = vmatpush.msra.mxu3 %v105_v0  ;;  %v108_v5 = vld [vmem:[#allocation2] sm:$0xff]  ;;  %v107_v9 = vld [vmem:[#allocation7] sm:$0xff]  ;;  %v241_v59 = vld [vmem:[#allocation2 + $0x10] sm:$0xff]  ;;  %s1028_s30 = smov [#allocation12]   ;;  %s689_s12 = sshll.u32 %s1154_s7, 4  ;;  %s690_s12 = int_to_ptr.hbm [resolvable:$true] %s689_s12 }
  0x1a   :  { %126 = vmatpush.msra.mxu0 %v104_v1  ;;  %195 = vmatpush.msra.mxu1 %v104_v1  ;;  %v176_v33 = vld [vmem:[#allocation2 + $0x8] sm:$0xff]  ;;  %s687_s9 = sshll.u32 %s1028_s30, 4  ;;  %s1029_s13 = smov [#allocation14]   ;;  %s688_s9 = int_to_ptr.vmem [resolvable:$true] %s687_s9 }
  0x1b   :  { %260 = vmatpush.msra.mxu2 %v104_v1  ;;  %325 = vmatpush.msra.mxu3 %v104_v1  ;;  %s698_s14 = sshll.u32 %s1029_s13, 4  ;;  %s700_s17 = sshll.u32 %s1155_s8, 4  ;;  %s699_s14 = int_to_ptr.vmem [resolvable:$true] %s698_s14  ;;  %s701_s17 = int_to_ptr.hbm [resolvable:$true] %s700_s17 }
  0x1c   :  { %127 = vmatpush.msra.mxu0 %v103_v2  ;;  %196 = vmatpush.msra.mxu1 %v103_v2  ;;  %s1030_s7 = smov [#allocation11]   ;;  %s678_s22 = sshll.u32 %s1153_s6, 4  ;;  %s679_s22 = int_to_ptr.hbm [resolvable:$true] %s678_s22 }
  0x1d   :  { %261 = vmatpush.msra.mxu2 %v103_v2  ;;  %326 = vmatpush.msra.mxu3 %v103_v2  ;;  %s676_s19 = sshll.u32 %s1030_s7, 4  ;;  %s677_s19 = int_to_ptr.vmem [resolvable:$true] %s676_s19 }
  0x1e   :  { %128 = vmatpush.msra.mxu0 %v102_v3  ;;  %197 = vmatpush.msra.mxu1 %v102_v3 }
  0x1f   :  { %721 = vmatmul.msk.f32.vlgmr.msra.gmra.mxu0 %vm109_vm0, %v106_v4  ;;  %262 = vmatpush.msra.mxu2 %v102_v3 }
  0x20   :  { %327 = vmatpush.msra.mxu3 %v102_v3  ;;  %389 = vmatpush.msrb.mxu0 %v105_v0 }
  0x21   :  { %454 = vmatpush.msrb.mxu1 %v105_v0  ;;  %519 = vmatpush.msrb.mxu2 %v105_v0 }
  0x22   :  { %390 = vmatpush.msrb.mxu0 %v104_v1  ;;  %584 = vmatpush.msrb.mxu3 %v105_v0 }
  0x23   :  { %455 = vmatpush.msrb.mxu1 %v104_v1  ;;  %520 = vmatpush.msrb.mxu2 %v104_v1 }
  0x24   :  { %391 = vmatpush.msrb.mxu0 %v103_v2  ;;  %585 = vmatpush.msrb.mxu3 %v104_v1 }
  0x25   :  { %456 = vmatpush.msrb.mxu1 %v103_v2  ;;  %521 = vmatpush.msrb.mxu2 %v103_v2 }
  0x26   :  { %392 = vmatpush.msrb.mxu0 %v102_v3  ;;  %586 = vmatpush.msrb.mxu3 %v103_v2 }
  0x27   :  { %457 = vmatpush.msrb.mxu1 %v102_v3  ;;  %522 = vmatpush.msrb.mxu2 %v102_v3 }
  0x28   :  { %587 = vmatpush.msrb.mxu3 %v102_v3 }
  0x9c   :  { %v130_v6 = vpop.f32.mrf.mxu0 }
  0x9d   :  { %v133_v7 = vadd.f32 %v130_v6, %v108_v5 }
  0x9f   :  { %752 = vtanh.f32 %v133_v7  ;;  %v722_v10 = vmul.f32 -1.442695, %v133_v7 }
  0xa1   :  { %754 = vpow2.f32 %v722_v10 }
  0xa5   :  { %v753_v8 = vpop.eup %752 }
  0xa6   :  { %160 = vrot.lane.b32.xlu0 %v753_v8, %s1025_s2 }
  0xa7   :  { %v755_v11 = vpop.eup %754 }
  0xa8   :  { %v137_v12 = vadd.f32 1.0, %v755_v11 }
  0xaa   :  { %756 = vrcp.f32 %v137_v12  ;;  %v149_v18 = vand.u32 2147483648, %v137_v12  ;;  %vm143_vm2 = vweird.f32 %v137_v12  ;;  %v147_v19 = vand.u32 2147483647, %v137_v12 }
  0xac   :  { %v150_v21 = vor.u32 1.1754944e-38, %v149_v18  ;;  %vm148_vm4 = vcmp.eq.f32.partialorder %v147_v19, 8.507059e+37 }
  0xae   :  { %155 = vrot.lane.b32.xlu0 %v107_v9, %s1025_s2 }
  0xb0   :  { %v757_v13 = vpop.eup %756 }
  0xb1   :  { %v139_v14 = vmul.f32 %v757_v13, %v137_v12  ;;  %vm144_vm1 = vweird.f32 %v757_v13 }
  0xb2   :  { %vm145_vm3 = vmor %vm143_vm2, %vm144_vm1 }
  0xb3   :  { %v140_v15 = vsub.f32 1.0, %v139_v14 }
  0xb5   :  { %v141_v16 = vmul.f32 %v757_v13, %v140_v15 }
  0xb7   :  { %v142_v17 = vadd.f32 %v757_v13, %v141_v16 }
  0xb9   :  { %v146_v20 = vsel %vm145_vm3, %v757_v13, %v142_v17 }
  0xba   :  { %v151_v23 = vsel %vm148_vm4, %v150_v21, %v146_v20  ;;  %v306_v21 = vld [vmem:[#allocation2 + $0x18] sm:$0xff] }
 0x118   :  { %v161_v22 = vpop.permute.xlu0 %160 }
 0x119   :  { %v163_v24 = vmul.f32 %v161_v22, %v151_v23 }
 0x11b   :  { %165 = vrot.lane.b32.xlu1 %v163_v24, %s1025_s2 }
 0x120   :  { %v156_v25 = vpop.permute.xlu0 %155 }
 0x121   :  { %v158_v26 = vmul.f32 %v156_v25, %v151_v23 }
 0x18d   :  { %v166_v27 = vpop.permute.xlu1 %165 }
 0x18e   :  { %v168_v28 = vadd.f32 %v166_v27, %v158_v26 }
 0x190   :  { %758 = vtanh.f32 %v168_v28 }
 0x196   :  { %v759_v29 = vpop.eup %758 }
 0x197   :  { %171 = vrot.lane.b32.xlu1 %v759_v29, %s1025_s2 }
 0x209   :  { %v172_v30 = vpop.permute.xlu1 %171 }
 0x20a   :  { %v174_v31 = vmul.f32 %v172_v30, %v151_v23 }
 0x20c   :  { %178 = vrot.lane.b32.xlu2 %v174_v31, %s1026_s4 }
 0x266   :  { %v179_v32 = vpop.permute.xlu2 %178 }
 0x267   :  { %723 = vmatmul.msk.f32.vlgmr.msra.gmra.mxu1 %vm109_vm0, %v179_v32 }
 0x2e4   :  { %v199_v34 = vpop.f32.mrf.mxu1 }
 0x2e5   :  { %v202_v35 = vadd.f32 %v199_v34, %v176_v33 }
 0x2e7   :  { %760 = vtanh.f32 %v202_v35  ;;  %v724_v37 = vmul.f32 -1.442695, %v202_v35 }
 0x2e9   :  { %762 = vpow2.f32 %v724_v37 }
 0x2ed   :  { %v761_v36 = vpop.eup %760 }
 0x2ee   :  { %225 = vrot.lane.b32.xlu2 %v761_v36, %s1025_s2 }
 0x2ef   :  { %v763_v38 = vpop.eup %762 }
 0x2f0   :  { %v206_v39 = vadd.f32 1.0, %v763_v38 }
 0x2f2   :  { %764 = vrcp.f32 %v206_v39  ;;  %v218_v45 = vand.u32 2147483648, %v206_v39  ;;  %vm212_vm6 = vweird.f32 %v206_v39  ;;  %v216_v46 = vand.u32 2147483647, %v206_v39 }
 0x2f4   :  { %v219_v48 = vor.u32 1.1754944e-38, %v218_v45  ;;  %vm217_vm8 = vcmp.eq.f32.partialorder %v216_v46, 8.507059e+37 }
 0x2f8   :  { %v765_v40 = vpop.eup %764 }
 0x2f9   :  { %v208_v41 = vmul.f32 %v765_v40, %v206_v39  ;;  %vm213_vm5 = vweird.f32 %v765_v40 }
 0x2fa   :  { %vm214_vm7 = vmor %vm212_vm6, %vm213_vm5 }
 0x2fb   :  { %v209_v42 = vsub.f32 1.0, %v208_v41 }
 0x2fd   :  { %v210_v43 = vmul.f32 %v765_v40, %v209_v42 }
 0x2ff   :  { %v211_v44 = vadd.f32 %v765_v40, %v210_v43 }
 0x301   :  { %v215_v47 = vsel %vm214_vm7, %v765_v40, %v211_v44 }
 0x302   :  { %v220_v50 = vsel %vm217_vm8, %v219_v48, %v215_v47  ;;  %v371_v47 = vld [vmem:[#allocation2 + $0x20] sm:$0xff] }
 0x303   :  { %v223_v52 = vmul.f32 %v220_v50, %v168_v28 }
 0x348   :  { %v226_v49 = vpop.permute.xlu2 %225 }
 0x349   :  { %v228_v51 = vmul.f32 %v226_v49, %v220_v50 }
 0x34b   :  { %230 = vrot.lane.b32.xlu0 %v228_v51, %s1025_s2 }
 0x3bd   :  { %v231_v53 = vpop.permute.xlu0 %230 }
 0x3be   :  { %v233_v54 = vadd.f32 %v231_v53, %v223_v52 }
 0x3c0   :  { %766 = vtanh.f32 %v233_v54 }
 0x3c6   :  { %v767_v55 = vpop.eup %766 }
 0x3c7   :  { %236 = vrot.lane.b32.xlu1 %v767_v55, %s1025_s2 }
 0x439   :  { %v237_v56 = vpop.permute.xlu1 %236 }
 0x43a   :  { %v239_v57 = vmul.f32 %v237_v56, %v220_v50 }
 0x43c   :  { %243 = vrot.lane.b32.xlu2 %v239_v57, %s1026_s4 }
 0x496   :  { %v244_v58 = vpop.permute.xlu2 %243 }
 0x497   :  { %725 = vmatmul.msk.f32.vlgmr.msra.gmra.mxu2 %vm109_vm0, %v244_v58 }
 0x51a   :  { %v264_v60 = vpop.f32.mrf.mxu2 }
 0x51b   :  { %v267_v61 = vadd.f32 %v264_v60, %v241_v59 }
 0x51d   :  { %768 = vtanh.f32 %v267_v61  ;;  %v726_v63 = vmul.f32 -1.442695, %v267_v61 }
 0x51f   :  { %770 = vpow2.f32 %v726_v63 }
 0x523   :  { %v769_v62 = vpop.eup %768 }
 0x524   :  { %290 = vrot.lane.b32.xlu0 %v769_v62, %s1025_s2 }
 0x525   :  { %v771_v0 = vpop.eup %770 }
 0x526   :  { %v271_v1 = vadd.f32 1.0, %v771_v0 }
 0x528   :  { %772 = vrcp.f32 %v271_v1  ;;  %v283_v7 = vand.u32 2147483648, %v271_v1  ;;  %vm277_vm10 = vweird.f32 %v271_v1  ;;  %v281_v8 = vand.u32 2147483647, %v271_v1 }
 0x52a   :  { %v284_v10 = vor.u32 1.1754944e-38, %v283_v7  ;;  %vm282_vm12 = vcmp.eq.f32.partialorder %v281_v8, 8.507059e+37 }
 0x52e   :  { %v773_v2 = vpop.eup %772 }
 0x52f   :  { %v273_v3 = vmul.f32 %v773_v2, %v271_v1  ;;  %vm278_vm9 = vweird.f32 %v773_v2 }
 0x530   :  { %vm279_vm11 = vmor %vm277_vm10, %vm278_vm9 }
 0x531   :  { %v274_v4 = vsub.f32 1.0, %v273_v3 }
 0x533   :  { %v275_v5 = vmul.f32 %v773_v2, %v274_v4 }
 0x535   :  { %v276_v6 = vadd.f32 %v773_v2, %v275_v5 }
 0x537   :  { %v280_v9 = vsel %vm279_vm11, %v773_v2, %v276_v6 }
 0x538   :  { %v285_v12 = vsel %vm282_vm12, %v284_v10, %v280_v9  ;;  %v436_v9 = vld [vmem:[#allocation2 + $0x28] sm:$0xff] }
 0x539   :  { %v288_v14 = vmul.f32 %v285_v12, %v233_v54 }
 0x596   :  { %v291_v11 = vpop.permute.xlu0 %290 }
 0x597   :  { %v293_v13 = vmul.f32 %v291_v11, %v285_v12 }
 0x599   :  { %295 = vrot.lane.b32.xlu1 %v293_v13, %s1025_s2 }
 0x60b   :  { %v296_v15 = vpop.permute.xlu1 %295 }
 0x60c   :  { %v298_v16 = vadd.f32 %v296_v15, %v288_v14 }
 0x60e   :  { %774 = vtanh.f32 %v298_v16 }
 0x614   :  { %v775_v17 = vpop.eup %774 }
 0x615   :  { %301 = vrot.lane.b32.xlu2 %v775_v17, %s1025_s2 }
 0x66f   :  { %v302_v18 = vpop.permute.xlu2 %301 }
 0x670   :  { %v304_v19 = vmul.f32 %v302_v18, %v285_v12 }
 0x672   :  { %308 = vrot.lane.b32.xlu0 %v304_v19, %s1026_s4 }
 0x6e4   :  { %v309_v20 = vpop.permute.xlu0 %308 }
 0x6e5   :  { %727 = vmatmul.msk.f32.vlgmr.msra.gmra.mxu3 %vm109_vm0, %v309_v20 }
 0x768   :  { %v329_v22 = vpop.f32.mrf.mxu3 }
 0x769   :  { %v332_v23 = vadd.f32 %v329_v22, %v306_v21 }
 0x76b   :  { %776 = vtanh.f32 %v332_v23  ;;  %v728_v25 = vmul.f32 -1.442695, %v332_v23 }
 0x76d   :  { %778 = vpow2.f32 %v728_v25 }
 0x771   :  { %v777_v24 = vpop.eup %776 }
 0x772   :  { %355 = vrot.lane.b32.xlu1 %v777_v24, %s1025_s2 }
 0x773   :  { %v779_v26 = vpop.eup %778 }
 0x774   :  { %v336_v27 = vadd.f32 1.0, %v779_v26 }
 0x776   :  { %780 = vrcp.f32 %v336_v27  ;;  %v348_v33 = vand.u32 2147483648, %v336_v27  ;;  %vm342_vm14 = vweird.f32 %v336_v27  ;;  %v346_v34 = vand.u32 2147483647, %v336_v27 }
 0x778   :  { %v349_v36 = vor.u32 1.1754944e-38, %v348_v33  ;;  %vm347_vm1 = vcmp.eq.f32.partialorder %v346_v34, 8.507059e+37 }
 0x77c   :  { %v781_v28 = vpop.eup %780 }
 0x77d   :  { %v338_v29 = vmul.f32 %v781_v28, %v336_v27  ;;  %vm343_vm13 = vweird.f32 %v781_v28 }
 0x77e   :  { %vm344_vm15 = vmor %vm342_vm14, %vm343_vm13 }
 0x77f   :  { %v339_v30 = vsub.f32 1.0, %v338_v29 }
 0x781   :  { %v340_v31 = vmul.f32 %v781_v28, %v339_v30 }
 0x783   :  { %v341_v32 = vadd.f32 %v781_v28, %v340_v31 }
 0x785   :  { %v345_v35 = vsel %vm344_vm15, %v781_v28, %v341_v32 }
 0x786   :  { %v350_v38 = vsel %vm347_vm1, %v349_v36, %v345_v35  ;;  %v501_v35 = vld [vmem:[#allocation2 + $0x30] sm:$0xff] }
 0x787   :  { %v353_v40 = vmul.f32 %v350_v38, %v298_v16 }
 0x7e4   :  { %v356_v37 = vpop.permute.xlu1 %355 }
 0x7e5   :  { %v358_v39 = vmul.f32 %v356_v37, %v350_v38 }
 0x7e7   :  { %360 = vrot.lane.b32.xlu2 %v358_v39, %s1025_s2 }
 0x841   :  { %v361_v41 = vpop.permute.xlu2 %360 }
 0x842   :  { %v363_v42 = vadd.f32 %v361_v41, %v353_v40 }
 0x844   :  { %782 = vtanh.f32 %v363_v42 }
 0x84a   :  { %v783_v43 = vpop.eup %782 }
 0x84b   :  { %366 = vrot.lane.b32.xlu0 %v783_v43, %s1025_s2 }
 0x8bd   :  { %v367_v44 = vpop.permute.xlu0 %366 }
 0x8be   :  { %v369_v45 = vmul.f32 %v367_v44, %v350_v38 }
 0x8c0   :  { %373 = vrot.lane.b32.xlu1 %v369_v45, %s1026_s4 }
 0x932   :  { %v374_v46 = vpop.permute.xlu1 %373 }
 0x933   :  { %729 = vmatmul.msk.f32.vlgmr.msrb.gmra.mxu0 %vm109_vm0, %v374_v46 }
 0x9b0   :  { %v394_v48 = vpop.f32.mrf.mxu0 }
 0x9b1   :  { %v397_v49 = vadd.f32 %v394_v48, %v371_v47 }
 0x9b3   :  { %784 = vtanh.f32 %v397_v49  ;;  %v730_v51 = vmul.f32 -1.442695, %v397_v49 }
 0x9b5   :  { %786 = vpow2.f32 %v730_v51 }
 0x9b9   :  { %v785_v50 = vpop.eup %784 }
 0x9ba   :  { %420 = vrot.lane.b32.xlu2 %v785_v50, %s1025_s2 }
 0x9bb   :  { %v787_v52 = vpop.eup %786 }
 0x9bc   :  { %v401_v53 = vadd.f32 1.0, %v787_v52 }
 0x9be   :  { %788 = vrcp.f32 %v401_v53  ;;  %v413_v59 = vand.u32 2147483648, %v401_v53  ;;  %vm407_vm3 = vweird.f32 %v401_v53  ;;  %v411_v60 = vand.u32 2147483647, %v401_v53 }
 0x9c0   :  { %v414_v62 = vor.u32 1.1754944e-38, %v413_v59  ;;  %vm412_vm5 = vcmp.eq.f32.partialorder %v411_v60, 8.507059e+37 }
 0x9c4   :  { %v789_v54 = vpop.eup %788 }
 0x9c5   :  { %v403_v55 = vmul.f32 %v789_v54, %v401_v53  ;;  %vm408_vm2 = vweird.f32 %v789_v54 }
 0x9c6   :  { %vm409_vm4 = vmor %vm407_vm3, %vm408_vm2 }
 0x9c7   :  { %v404_v56 = vsub.f32 1.0, %v403_v55 }
 0x9c9   :  { %v405_v57 = vmul.f32 %v789_v54, %v404_v56 }
 0x9cb   :  { %v406_v58 = vadd.f32 %v789_v54, %v405_v57 }
 0x9cd   :  { %v410_v61 = vsel %vm409_vm4, %v789_v54, %v406_v58 }
 0x9ce   :  { %v415_v0 = vsel %vm412_vm5, %v414_v62, %v410_v61  ;;  %v566_v61 = vld [vmem:[#allocation2 + $0x38] sm:$0xff] }
 0x9cf   :  { %v418_v2 = vmul.f32 %v415_v0, %v363_v42 }
 0xa14   :  { %v421_v63 = vpop.permute.xlu2 %420 }
 0xa15   :  { %v423_v1 = vmul.f32 %v421_v63, %v415_v0 }
 0xa17   :  { %425 = vrot.lane.b32.xlu0 %v423_v1, %s1025_s2 }
 0xa89   :  { %v426_v3 = vpop.permute.xlu0 %425 }
 0xa8a   :  { %v428_v4 = vadd.f32 %v426_v3, %v418_v2 }
 0xa8c   :  { %790 = vtanh.f32 %v428_v4 }
 0xa92   :  { %v791_v5 = vpop.eup %790 }
 0xa93   :  { %431 = vrot.lane.b32.xlu1 %v791_v5, %s1025_s2 }
 0xb05   :  { %v432_v6 = vpop.permute.xlu1 %431 }
 0xb06   :  { %v434_v7 = vmul.f32 %v432_v6, %v415_v0 }
 0xb08   :  { %438 = vrot.lane.b32.xlu2 %v434_v7, %s1026_s4 }
 0xb62   :  { %v439_v8 = vpop.permute.xlu2 %438 }
 0xb63   :  { %731 = vmatmul.msk.f32.vlgmr.msrb.gmra.mxu1 %vm109_vm0, %v439_v8 }
 0xbe0   :  { %v459_v10 = vpop.f32.mrf.mxu1 }
 0xbe1   :  { %v462_v11 = vadd.f32 %v459_v10, %v436_v9 }
 0xbe3   :  { %792 = vtanh.f32 %v462_v11  ;;  %v732_v13 = vmul.f32 -1.442695, %v462_v11 }
 0xbe5   :  { %794 = vpow2.f32 %v732_v13 }
 0xbe9   :  { %v793_v12 = vpop.eup %792 }
 0xbea   :  { %485 = vrot.lane.b32.xlu0 %v793_v12, %s1025_s2 }
 0xbeb   :  { %v795_v14 = vpop.eup %794 }
 0xbec   :  { %v466_v15 = vadd.f32 1.0, %v795_v14 }
 0xbee   :  { %796 = vrcp.f32 %v466_v15  ;;  %v478_v21 = vand.u32 2147483648, %v466_v15  ;;  %vm472_vm7 = vweird.f32 %v466_v15  ;;  %v476_v22 = vand.u32 2147483647, %v466_v15 }
 0xbf0   :  { %v479_v24 = vor.u32 1.1754944e-38, %v478_v21  ;;  %vm477_vm9 = vcmp.eq.f32.partialorder %v476_v22, 8.507059e+37  ;;  %v642_v21 = vld [vmem:[#allocation10 + $0x10] sm:$0xff]  ;;  %v641_v22 = vld [vmem:[#allocation10 + $0x8] sm:$0xff] }
 0xbf4   :  { %v797_v16 = vpop.eup %796 }
 0xbf5   :  { %v468_v17 = vmul.f32 %v797_v16, %v466_v15  ;;  %vm473_vm6 = vweird.f32 %v797_v16 }
 0xbf6   :  { %vm474_vm8 = vmor %vm472_vm7, %vm473_vm6 }
 0xbf7   :  { %v469_v18 = vsub.f32 1.0, %v468_v17 }
 0xbf9   :  { %v470_v19 = vmul.f32 %v797_v16, %v469_v18 }
 0xbfb   :  { %v471_v20 = vadd.f32 %v797_v16, %v470_v19 }
 0xbfd   :  { %v475_v23 = vsel %vm474_vm8, %v797_v16, %v471_v20  ;;  %v643_v20 = vld [vmem:[#allocation10 + $0x18] sm:$0xff] }
 0xbfe   :  { %v480_v26 = vsel %vm477_vm9, %v479_v24, %v475_v23  ;;  %662 = vmatpush.msra.mxu0 %v643_v20  ;;  %v640_v23 = vld [vmem:[#allocation10] sm:$0xff] }
 0xbff   :  { %v483_v28 = vmul.f32 %v480_v26, %v428_v4 }
 0xc00   :  { %663 = vmatpush.msra.mxu0 %v642_v21 }
 0xc02   :  { %664 = vmatpush.msra.mxu0 %v641_v22 }
 0xc04   :  { %665 = vmatpush.msra.mxu0 %v640_v23 }
 0xc5c   :  { %v486_v25 = vpop.permute.xlu0 %485 }
 0xc5d   :  { %v488_v27 = vmul.f32 %v486_v25, %v480_v26 }
 0xc5f   :  { %490 = vrot.lane.b32.xlu1 %v488_v27, %s1025_s2 }
 0xcd1   :  { %v491_v29 = vpop.permute.xlu1 %490 }
 0xcd2   :  { %v493_v30 = vadd.f32 %v491_v29, %v483_v28  ;;  %v751_v28 = vld [vmem:[%s1152_s5] ss:$0 sm:$0xff] }
 0xcd4   :  { %798 = vtanh.f32 %v493_v30 }
 0xcda   :  { %v799_v31 = vpop.eup %798 }
 0xcdb   :  { %496 = vrot.lane.b32.xlu2 %v799_v31, %s1025_s2 }
 0xd35   :  { %v497_v32 = vpop.permute.xlu2 %496 }
 0xd36   :  { %v499_v33 = vmul.f32 %v497_v32, %v480_v26 }
 0xd38   :  { %503 = vrot.lane.b32.xlu0 %v499_v33, %s1026_s4 }
 0xdaa   :  { %v504_v34 = vpop.permute.xlu0 %503 }
 0xdab   :  { %733 = vmatmul.msk.f32.vlgmr.msrb.gmra.mxu2 %vm109_vm0, %v504_v34 }
 0xe2e   :  { %v524_v36 = vpop.f32.mrf.mxu2 }
 0xe2f   :  { %v527_v37 = vadd.f32 %v524_v36, %v501_v35 }
 0xe31   :  { %800 = vtanh.f32 %v527_v37  ;;  %v734_v39 = vmul.f32 -1.442695, %v527_v37 }
 0xe33   :  { %802 = vpow2.f32 %v734_v39 }
 0xe37   :  { %v801_v38 = vpop.eup %800 }
 0xe38   :  { %550 = vrot.lane.b32.xlu1 %v801_v38, %s1025_s2 }
 0xe39   :  { %v803_v40 = vpop.eup %802 }
 0xe3a   :  { %v531_v41 = vadd.f32 1.0, %v803_v40 }
 0xe3c   :  { %804 = vrcp.f32 %v531_v41  ;;  %v543_v47 = vand.u32 2147483648, %v531_v41  ;;  %vm537_vm11 = vweird.f32 %v531_v41  ;;  %v541_v48 = vand.u32 2147483647, %v531_v41 }
 0xe3e   :  { %v544_v50 = vor.u32 1.1754944e-38, %v543_v47  ;;  %vm542_vm13 = vcmp.eq.f32.partialorder %v541_v48, 8.507059e+37 }
 0xe42   :  { %v805_v42 = vpop.eup %804 }
 0xe43   :  { %v533_v43 = vmul.f32 %v805_v42, %v531_v41  ;;  %vm538_vm10 = vweird.f32 %v805_v42 }
 0xe44   :  { %vm539_vm12 = vmor %vm537_vm11, %vm538_vm10 }
 0xe45   :  { %v534_v44 = vsub.f32 1.0, %v533_v43 }
 0xe47   :  { %v535_v45 = vmul.f32 %v805_v42, %v534_v44 }
 0xe49   :  { %v536_v46 = vadd.f32 %v805_v42, %v535_v45 }
 0xe4b   :  { %v540_v49 = vsel %vm539_vm12, %v805_v42, %v536_v46 }
 0xe4c   :  { %v545_v52 = vsel %vm542_vm13, %v544_v50, %v540_v49 }
 0xe4d   :  { %v548_v54 = vmul.f32 %v545_v52, %v493_v30 }
 0xeaa   :  { %v551_v51 = vpop.permute.xlu1 %550 }
 0xeab   :  { %v553_v53 = vmul.f32 %v551_v51, %v545_v52 }
 0xead   :  { %555 = vrot.lane.b32.xlu2 %v553_v53, %s1025_s2 }
 0xf07   :  { %v556_v55 = vpop.permute.xlu2 %555 }
 0xf08   :  { %v558_v56 = vadd.f32 %v556_v55, %v548_v54 }
 0xf0a   :  { %806 = vtanh.f32 %v558_v56 }
 0xf10   :  { %v807_v57 = vpop.eup %806 }
 0xf11   :  { %561 = vrot.lane.b32.xlu0 %v807_v57, %s1025_s2 }
 0xf83   :  { %v562_v58 = vpop.permute.xlu0 %561 }
 0xf84   :  { %v564_v59 = vmul.f32 %v562_v58, %v545_v52 }
 0xf86   :  { %568 = vrot.lane.b32.xlu1 %v564_v59, %s1026_s4 }
 0xff8   :  { %v569_v60 = vpop.permute.xlu1 %568 }
 0xff9   :  { %735 = vmatmul.msk.f32.vlgmr.msrb.gmra.mxu3 %vm109_vm0, %v569_v60 }
0x107c   :  { %v589_v62 = vpop.f32.mrf.mxu3 }
0x107d   :  { %v592_v63 = vadd.f32 %v589_v62, %v566_v61 }
0x107f   :  { %808 = vtanh.f32 %v592_v63  ;;  %v736_v1 = vmul.f32 -1.442695, %v592_v63 }
0x1081   :  { %810 = vpow2.f32 %v736_v1 }
0x1085   :  { %v809_v0 = vpop.eup %808 }
0x1086   :  { %615 = vrot.lane.b32.xlu2 %v809_v0, %s1025_s2 }
0x1087   :  { %v811_v2 = vpop.eup %810 }
0x1088   :  { %v596_v3 = vadd.f32 1.0, %v811_v2 }
0x108a   :  { %812 = vrcp.f32 %v596_v3  ;;  %v608_v9 = vand.u32 2147483648, %v596_v3  ;;  %vm602_vm15 = vweird.f32 %v596_v3  ;;  %v606_v10 = vand.u32 2147483647, %v596_v3 }
0x108c   :  { %v609_v12 = vor.u32 1.1754944e-38, %v608_v9  ;;  %vm607_vm2 = vcmp.eq.f32.partialorder %v606_v10, 8.507059e+37 }
0x1090   :  { %v813_v4 = vpop.eup %812 }
0x1091   :  { %v598_v5 = vmul.f32 %v813_v4, %v596_v3  ;;  %vm603_vm14 = vweird.f32 %v813_v4 }
0x1092   :  { %vm604_vm1 = vmor %vm602_vm15, %vm603_vm14 }
0x1093   :  { %v599_v6 = vsub.f32 1.0, %v598_v5 }
0x1095   :  { %v600_v7 = vmul.f32 %v813_v4, %v599_v6 }
0x1097   :  { %v601_v8 = vadd.f32 %v813_v4, %v600_v7 }
0x1099   :  { %v605_v11 = vsel %vm604_vm1, %v813_v4, %v601_v8 }
0x109a   :  { %v610_v14 = vsel %vm607_vm2, %v609_v12, %v605_v11 }
0x109b   :  { %v613_v16 = vmul.f32 %v610_v14, %v558_v56 }
0x10e0   :  { %v616_v13 = vpop.permute.xlu2 %615 }
0x10e1   :  { %v618_v15 = vmul.f32 %v616_v13, %v610_v14 }
0x10e3   :  { %620 = vrot.lane.b32.xlu0 %v618_v15, %s1025_s2 }
0x1155   :  { %v621_v17 = vpop.permute.xlu0 %620 }
0x1156   :  { %v623_v18 = vadd.f32 %v621_v17, %v613_v16 }
0x1158   :  { %814 = vtanh.f32 %v623_v18  ;;  %636 = vrot.lane.b32.xlu0 %v623_v18, %s1027_s29 }
0x115e   :  { %v815_v19 = vpop.eup %814 }
0x115f   :  { %626 = vrot.lane.b32.xlu1 %v815_v19, %s1025_s2 }
0x11ca   :  { %v637_v24 = vpop.permute.xlu0 %636 }
0x11cb   :  { %639 = vst.msk [vmem:[#allocation14] sm:$0xff] %vm109_vm0, %v637_v24 }
0x11d1   :  { %v627_v25 = vpop.permute.xlu1 %626 }
0x11d2   :  { %v629_v26 = vmul.f32 %v627_v25, %v610_v14 }
0x11d4   :  { %631 = vrot.lane.b32.xlu2 %v629_v26, %s1026_s4 }
0x122e   :  { %v632_v27 = vpop.permute.xlu2 %631 }
0x122f   :  { %634 = vst.msk [vmem:[#allocation12] sm:$0xff] %vm109_vm0, %v632_v27  ;;  %737 = vmatmul.msk.f32.vlgmr.msra.gmra.mxu0 %vm109_vm0, %v632_v27 }
0x1230   :  { %692 = dma.vmem_to_hbm [thread:$0]  %s688_s9, 128, %s690_s12, [#allocation13]  }
0x1231   :  { %703 = dma.vmem_to_hbm [thread:$0]  %s699_s14, 128, %s701_s17, [#allocation13]  }
0x12ac   :  { %v667_v29 = vpop.f32.mrf.mxu0 }
0x12ad   :  { %v668_v30 = vadd.f32 %v751_v28, %v667_v29 }
0x12af   :  { %670 = vst [vmem:[#allocation11] sm:$0xff] %v668_v30 }
0x12b0   :  { %681 = dma.vmem_to_hbm [thread:$0]  %s677_s19, 128, %s679_s22, [#allocation4]  }
0x12b1   :  { %1014 = dma.done.wait [#allocation4], 128  }
0x12b2   :  { %1015 = vsyncadd [#allocation4], 4294967168 }
0x12b3   :  { %1016 = dma.done.wait [#allocation13], 256  }
0x12b4   :  { %1017 = vsyncadd [#allocation13], 4294967040 }
0x12b5   :  { %716 = vsyncpa [#allocation3], 1 }
0x12b6   :  { %717 = vsyncpa [#allocation6], 1 }
0x12b7   :  { %718 = vsyncpa [#allocation9], 1 }
0x12b8   :  { %719 = vsyncpa [#allocation4], 1 }
0x12b9   :  { %720 = vsyncpa [#allocation13], 1 }

</bundles_post_ra>
